<compile_context>
chip_gen: v7x
topology: tpu7x:2x2x1
jax: 0.10.0
libtpu: 0.0.40
codegen_flags: <defaults>
</compile_context>

<pallas_src>
import jax
import jax.numpy as jnp
from jax.experimental import pallas as pl
from jax.experimental.pallas import tpu as pltpu


def _bidaf_attention_kernel(c_ref, q_ref, cmask_ref, qmask_ref,
                            cw_ref, qw_ref, cqw_ref, bias_ref, x_ref):
  c = c_ref[0]            # (c_len, H)
  q = q_ref[0]            # (q_len, H)
  cm = cmask_ref[0]       # (c_len, 1)
  qm = qmask_ref[0]       # (1, q_len)
  cw = cw_ref[...]        # (1, H)
  qw = qw_ref[...]        # (1, H)
  cqw = cqw_ref[...]      # (1, H)
  bias = bias_ref[0]      # scalar from SMEM

  # ---- similarity matrix (MXU) ----
  # s = (c * cq_w) q^T + (c c_w) 1^T + 1 (q q_w)^T + bias
  s = jnp.einsum('ch,qh->cq', c * cqw, q,
                 preferred_element_type=jnp.float32)          # (c_len, q_len)
  s0 = jnp.einsum('ch,kh->ck', c, cw,
                  preferred_element_type=jnp.float32)         # (c_len, 1)
  s1row = jnp.einsum('qh,kh->kq', q, qw,
                     preferred_element_type=jnp.float32)      # (1, q_len)
  s = s + s0 + s1row + bias

  neg = jnp.float32(-1e30)

  # ---- masked softmax over the query axis (dim 2 in PyTorch terms) ----
  lq = qm * s + (1.0 - qm) * neg
  lq = lq - jnp.max(lq, axis=1, keepdims=True)
  eq = jnp.exp(lq)
  s1p = eq / jnp.sum(eq, axis=1, keepdims=True)               # (c_len, q_len)

  # ---- masked softmax over the context axis (dim 1 in PyTorch terms) ----
  lc = cm * s + (1.0 - cm) * neg
  lc = lc - jnp.max(lc, axis=0, keepdims=True)
  ec = jnp.exp(lc)
  s2p = ec / jnp.sum(ec, axis=0, keepdims=True)               # (c_len, q_len)

  # ---- attention outputs (MXU) ----
  a = jnp.dot(s1p, q, preferred_element_type=jnp.float32)     # (c_len, H)
  ss = jnp.einsum('cq,dq->cd', s1p, s2p,
                  preferred_element_type=jnp.float32)         # (c_len, c_len)
  b = jnp.dot(ss, c, preferred_element_type=jnp.float32)      # (c_len, H)

  # Single lane-dense store of [c, a, c*a, c*b].
  x_ref[0] = jnp.concatenate([c, a, c * a, c * b], axis=-1)   # (c_len, 4H)


def bidaf_attention(c, q, c_mask, q_mask, params):
  """c: (B, c_len, H), q: (B, q_len, H), masks: (B, c_len)/(B, q_len).

  Returns x: (B, c_len, 4H)."""
  B, c_len, H = c.shape
  q_len = q.shape[1]

  cm = c_mask.astype(jnp.float32).reshape(B, c_len, 1)
  qm = q_mask.astype(jnp.float32).reshape(B, 1, q_len)
  cw = params['c_weight'].reshape(1, H).astype(jnp.float32)
  qw = params['q_weight'].reshape(1, H).astype(jnp.float32)
  cqw = params['cq_weight'].reshape(1, H).astype(jnp.float32)
  bias = params['bias'].reshape(1).astype(jnp.float32)

  x = pl.pallas_call(
      _bidaf_attention_kernel,
      out_shape=jax.ShapeDtypeStruct((B, c_len, 4 * H), jnp.float32),
      grid=(B,),
      in_specs=[
          pl.BlockSpec((1, c_len, H), lambda b: (b, 0, 0)),        # c
          pl.BlockSpec((1, q_len, H), lambda b: (b, 0, 0)),        # q
          pl.BlockSpec((1, c_len, 1), lambda b: (b, 0, 0)),        # c_mask (col)
          pl.BlockSpec((1, 1, q_len), lambda b: (b, 0, 0)),        # q_mask (row)
          pl.BlockSpec((1, H), lambda b: (0, 0)),                  # c_weight
          pl.BlockSpec((1, H), lambda b: (0, 0)),                  # q_weight
          pl.BlockSpec((1, H), lambda b: (0, 0)),                  # cq_weight
          pl.BlockSpec(memory_space=pltpu.MemorySpace.SMEM),       # bias scalar
      ],
      out_specs=pl.BlockSpec((1, c_len, 4 * H), lambda b: (b, 0, 0)),
      compiler_params=pltpu.CompilerParams(
          dimension_semantics=("parallel",)),
  )(c.astype(jnp.float32), q.astype(jnp.float32), cm, qm, cw, qw, cqw, bias)
  return x


def init_params(key, hidden_size):
  """Matches the PyTorch module's parameter shapes (xavier_uniform init)."""
  H = hidden_size
  k1, k2, k3 = jax.random.split(key, 3)
  bound = (6.0 / (H + 1)) ** 0.5
  c_weight = jax.random.uniform(k1, (H, 1), jnp.float32, -bound, bound)
  q_weight = jax.random.uniform(k2, (H, 1), jnp.float32, -bound, bound)
  cq_weight = jax.random.uniform(k3, (1, 1, H), jnp.float32, -bound, bound)
  bias = jnp.zeros((1,), jnp.float32)
  return dict(c_weight=c_weight, q_weight=q_weight,
              cq_weight=cq_weight, bias=bias)


def ref_forward(c, q, c_mask, q_mask, params):
  """Pure-JAX reference with identical semantics (for validation)."""
  hi = jax.lax.Precision.HIGHEST
  cw = params['c_weight'].reshape(-1)
  qw = params['q_weight'].reshape(-1)
  cqw = params['cq_weight'].reshape(1, 1, -1)
  bias = params['bias'].reshape(())

  s0 = jnp.einsum('bch,h->bc', c, cw, precision=hi)[:, :, None]
  s1 = jnp.einsum('bqh,h->bq', q, qw, precision=hi)[:, None, :]
  s2 = jnp.einsum('bch,bqh->bcq', c * cqw, q, precision=hi)
  s = s0 + s1 + s2 + bias

  cm = c_mask.astype(jnp.float32)[:, :, None]
  qm = q_mask.astype(jnp.float32)[:, None, :]
  s1p = jax.nn.softmax(qm * s + (1.0 - qm) * (-1e30), axis=2)
  s2p = jax.nn.softmax(cm * s + (1.0 - cm) * (-1e30), axis=1)

  a = jnp.einsum('bcq,bqh->bch', s1p, q, precision=hi)
  ss = jnp.einsum('bcq,bdq->bcd', s1p, s2p, precision=hi)
  b = jnp.einsum('bcd,bdh->bch', ss, c, precision=hi)
  return jnp.concatenate([c, a, c * a, c * b], axis=2)


if __name__ == "__main__":
  B, c_len, q_len, H = 2, 16, 12, 64

  key = jax.random.PRNGKey(0)
  kc, kq, kp = jax.random.split(key, 3)
  c = jax.random.normal(kc, (B, c_len, H), jnp.float32)
  q = jax.random.normal(kq, (B, q_len, H), jnp.float32)
  # Prefix-valid masks, as in BiDAF.
  c_lengths = jnp.array([c_len, 11], jnp.int32)
  q_lengths = jnp.array([q_len, 7], jnp.int32)
  c_mask = jnp.arange(c_len)[None, :] < c_lengths[:, None]
  q_mask = jnp.arange(q_len)[None, :] < q_lengths[:, None]

  params = init_params(kp, H)

  x = bidaf_attention(c, q, c_mask, q_mask, params)
  jax.block_until_ready(x)

  x_ref = ref_forward(c, q, c_mask, q_mask, params)
  assert x.shape == (B, c_len, 4 * H)
  max_err = float(jnp.max(jnp.abs(x - x_ref)))
  assert jnp.allclose(x, x_ref, atol=1e-2, rtol=1e-2), f"max err {max_err}"

  print("KERNEL_OK")
</pallas_src>

<mosaic_0001>
module attributes {stable_mosaic.version = 11 : i64} {
  func.func @_bidaf_attention_kernel(%arg0: i32, %arg1: memref<1x16x64xf32, #tpu.memory_space<vmem>>, %arg2: memref<1x12x64xf32, #tpu.memory_space<vmem>>, %arg3: memref<1x16x1xf32, #tpu.memory_space<vmem>>, %arg4: memref<1x1x12xf32, #tpu.memory_space<vmem>>, %arg5: memref<1x64xf32, #tpu.memory_space<vmem>>, %arg6: memref<1x64xf32, #tpu.memory_space<vmem>>, %arg7: memref<1x64xf32, #tpu.memory_space<vmem>>, %arg8: memref<1xf32, #tpu.memory_space<smem>>, %arg9: memref<1x16x256xf32, #tpu.memory_space<vmem>>) attributes {dimension_semantics = [#tpu.dimension_semantics<parallel>], iteration_bounds = array<i64: 2>, scalar_prefetch = 0 : i64, scratch_operands = 0 : i64, tpu.core_type = #tpu.core_type<tc>, window_params = [{transform_indices = @transform_0, window_bounds = array<i64: 1, 16, 64>}, {transform_indices = @transform_1, window_bounds = array<i64: 1, 12, 64>}, {transform_indices = @transform_2, window_bounds = array<i64: 1, 16, 1>}, {transform_indices = @transform_3, window_bounds = array<i64: 1, 1, 12>}, {pipeline_mode = #tpu.pipeline_mode<synchronous>, transform_indices = @transform_4, window_bounds = array<i64: 1, 64>}, {pipeline_mode = #tpu.pipeline_mode<synchronous>, transform_indices = @transform_5, window_bounds = array<i64: 1, 64>}, {pipeline_mode = #tpu.pipeline_mode<synchronous>, transform_indices = @transform_6, window_bounds = array<i64: 1, 64>}, {transform_indices = @transform_7, window_bounds = array<i64: 1>}, {transform_indices = @transform_8, window_bounds = array<i64: 1, 16, 256>}]} {
    %c0 = arith.constant 0 : index
    %c0_0 = arith.constant 0 : index
    %c0_1 = arith.constant 0 : index
    %0 = vector.load %arg1[%c0, %c0_0, %c0_1] : memref<1x16x64xf32, #tpu.memory_space<vmem>>, vector<1x16x64xf32>
    %1 = vector.shape_cast %0 : vector<1x16x64xf32> to vector<16x64xf32>
    %c0_2 = arith.constant 0 : index
    %c0_3 = arith.constant 0 : index
    %c0_4 = arith.constant 0 : index
    %2 = vector.load %arg2[%c0_2, %c0_3, %c0_4] : memref<1x12x64xf32, #tpu.memory_space<vmem>>, vector<1x12x64xf32>
    %3 = vector.shape_cast %2 : vector<1x12x64xf32> to vector<12x64xf32>
    %c0_5 = arith.constant 0 : index
    %c0_6 = arith.constant 0 : index
    %c0_7 = arith.constant 0 : index
    %4 = vector.load %arg3[%c0_5, %c0_6, %c0_7] : memref<1x16x1xf32, #tpu.memory_space<vmem>>, vector<1x16x1xf32>
    %5 = vector.shape_cast %4 : vector<1x16x1xf32> to vector<16x1xf32>
    %c0_8 = arith.constant 0 : index
    %c0_9 = arith.constant 0 : index
    %c0_10 = arith.constant 0 : index
    %6 = vector.load %arg4[%c0_8, %c0_9, %c0_10] : memref<1x1x12xf32, #tpu.memory_space<vmem>>, vector<1x1x12xf32>
    %7 = vector.shape_cast %6 : vector<1x1x12xf32> to vector<1x12xf32>
    %c0_11 = arith.constant 0 : index
    %c0_12 = arith.constant 0 : index
    %8 = vector.load %arg5[%c0_11, %c0_12] : memref<1x64xf32, #tpu.memory_space<vmem>>, vector<1x64xf32>
    %c0_13 = arith.constant 0 : index
    %c0_14 = arith.constant 0 : index
    %9 = vector.load %arg6[%c0_13, %c0_14] : memref<1x64xf32, #tpu.memory_space<vmem>>, vector<1x64xf32>
    %c0_15 = arith.constant 0 : index
    %c0_16 = arith.constant 0 : index
    %10 = vector.load %arg7[%c0_15, %c0_16] : memref<1x64xf32, #tpu.memory_space<vmem>>, vector<1x64xf32>
    %c0_17 = arith.constant 0 : index
    %11 = memref.load %arg8[%c0_17] : memref<1xf32, #tpu.memory_space<smem>>
    %12 = vector.broadcast %10 : vector<1x64xf32> to vector<16x64xf32>
    %13 = arith.mulf %1, %12 : vector<16x64xf32>
    "tpu.trace_start"() <{level = 10 : i32, message = "ch,qh->cq"}> : () -> ()
    %cst = arith.constant dense<0.000000e+00> : vector<16x12xf32>
    %14 = tpu.matmul %13, %3, %cst {dimension_numbers = #tpu.dot_dimension_numbers<[1], [1], [0], [0], [0, 0, 1, 0], [], []>} : vector<16x64xf32>, vector<12x64xf32>, vector<16x12xf32> -> vector<16x12xf32>
    "tpu.trace_stop"() : () -> ()
    "tpu.trace_start"() <{level = 10 : i32, message = "ch,kh->ck"}> : () -> ()
    %cst_18 = arith.constant dense<0.000000e+00> : vector<16x1xf32>
    %15 = tpu.matmul %1, %8, %cst_18 {dimension_numbers = #tpu.dot_dimension_numbers<[1], [1], [0], [0], [0, 0, 1, 0], [], []>} : vector<16x64xf32>, vector<1x64xf32>, vector<16x1xf32> -> vector<16x1xf32>
    "tpu.trace_stop"() : () -> ()
    "tpu.trace_start"() <{level = 10 : i32, message = "qh,kh->kq"}> : () -> ()
    %cst_19 = arith.constant dense<0.000000e+00> : vector<1x12xf32>
    %16 = tpu.matmul %9, %3, %cst_19 {dimension_numbers = #tpu.dot_dimension_numbers<[1], [1], [0], [0], [0, 0, 1, 0], [], []>} : vector<1x64xf32>, vector<12x64xf32>, vector<1x12xf32> -> vector<1x12xf32>
    "tpu.trace_stop"() : () -> ()
    %17 = vector.broadcast %15 : vector<16x1xf32> to vector<16x12xf32>
    %18 = arith.addf %14, %17 : vector<16x12xf32>
    %19 = vector.broadcast %16 : vector<1x12xf32> to vector<16x12xf32>
    %20 = arith.addf %18, %19 : vector<16x12xf32>
    %21 = vector.broadcast %11 : f32 to vector<16x12xf32>
    %22 = arith.addf %20, %21 : vector<16x12xf32>
    %23 = vector.broadcast %7 : vector<1x12xf32> to vector<16x12xf32>
    %24 = arith.mulf %23, %22 : vector<16x12xf32>
    %cst_20 = arith.constant 1.000000e+00 : f32
    %25 = vector.broadcast %cst_20 : f32 to vector<1x12xf32>
    %26 = arith.subf %25, %7 : vector<1x12xf32>
    %cst_21 = arith.constant -1.000000e+30 : f32
    %27 = vector.broadcast %cst_21 : f32 to vector<1x12xf32>
    %28 = arith.mulf %26, %27 : vector<1x12xf32>
    %29 = vector.broadcast %28 : vector<1x12xf32> to vector<16x12xf32>
    %30 = arith.addf %24, %29 : vector<16x12xf32>
    %cst_22 = arith.constant dense<0xFF800000> : vector<16xf32>
    %31 = vector.multi_reduction <maximumf>, %30, %cst_22 [1] : vector<16x12xf32> to vector<16xf32>
    %32 = vector.shape_cast %31 : vector<16xf32> to vector<16x1xf32>
    %33 = vector.broadcast %32 : vector<16x1xf32> to vector<16x12xf32>
    %34 = arith.subf %30, %33 : vector<16x12xf32>
    %35 = math.exp %34 : vector<16x12xf32>
    %cst_23 = arith.constant dense<0.000000e+00> : vector<16xf32>
    %36 = vector.multi_reduction <add>, %35, %cst_23 [1] : vector<16x12xf32> to vector<16xf32>
    %37 = vector.shape_cast %36 : vector<16xf32> to vector<16x1xf32>
    %38 = vector.broadcast %37 : vector<16x1xf32> to vector<16x12xf32>
    %39 = arith.divf %35, %38 : vector<16x12xf32>
    %40 = vector.broadcast %5 : vector<16x1xf32> to vector<16x12xf32>
    %41 = arith.mulf %40, %22 : vector<16x12xf32>
    %cst_24 = arith.constant 1.000000e+00 : f32
    %42 = vector.broadcast %cst_24 : f32 to vector<16x1xf32>
    %43 = arith.subf %42, %5 : vector<16x1xf32>
    %cst_25 = arith.constant -1.000000e+30 : f32
    %44 = vector.broadcast %cst_25 : f32 to vector<16x1xf32>
    %45 = arith.mulf %43, %44 : vector<16x1xf32>
    %46 = vector.broadcast %45 : vector<16x1xf32> to vector<16x12xf32>
    %47 = arith.addf %41, %46 : vector<16x12xf32>
    %cst_26 = arith.constant dense<0xFF800000> : vector<12xf32>
    %48 = vector.multi_reduction <maximumf>, %47, %cst_26 [0] : vector<16x12xf32> to vector<12xf32>
    %49 = vector.shape_cast %48 : vector<12xf32> to vector<1x12xf32>
    %50 = vector.broadcast %49 : vector<1x12xf32> to vector<16x12xf32>
    %51 = arith.subf %47, %50 : vector<16x12xf32>
    %52 = math.exp %51 : vector<16x12xf32>
    %cst_27 = arith.constant dense<0.000000e+00> : vector<12xf32>
    %53 = vector.multi_reduction <add>, %52, %cst_27 [0] : vector<16x12xf32> to vector<12xf32>
    %54 = vector.shape_cast %53 : vector<12xf32> to vector<1x12xf32>
    %55 = vector.broadcast %54 : vector<1x12xf32> to vector<16x12xf32>
    %56 = arith.divf %52, %55 : vector<16x12xf32>
    %cst_28 = arith.constant dense<0.000000e+00> : vector<16x64xf32>
    %57 = tpu.matmul %39, %3, %cst_28 {dimension_numbers = #tpu.dot_dimension_numbers<[1], [0], [0], [1], [0, 0, 1, 1], [], []>} : vector<16x12xf32>, vector<12x64xf32>, vector<16x64xf32> -> vector<16x64xf32>
    "tpu.trace_start"() <{level = 10 : i32, message = "cq,dq->cd"}> : () -> ()
    %cst_29 = arith.constant dense<0.000000e+00> : vector<16x16xf32>
    %58 = tpu.matmul %39, %56, %cst_29 {dimension_numbers = #tpu.dot_dimension_numbers<[1], [1], [0], [0], [0, 0, 1, 0], [], []>} : vector<16x12xf32>, vector<16x12xf32>, vector<16x16xf32> -> vector<16x16xf32>
    "tpu.trace_stop"() : () -> ()
    %cst_30 = arith.constant dense<0.000000e+00> : vector<16x64xf32>
    %59 = tpu.matmul %58, %1, %cst_30 {dimension_numbers = #tpu.dot_dimension_numbers<[1], [0], [0], [1], [0, 0, 1, 1], [], []>} : vector<16x16xf32>, vector<16x64xf32>, vector<16x64xf32> -> vector<16x64xf32>
    %60 = arith.mulf %1, %57 : vector<16x64xf32>
    %61 = arith.mulf %1, %59 : vector<16x64xf32>
    %62 = tpu.concatenate %1, %57, %60, %61 in 1 : vector<16x64xf32>, vector<16x64xf32>, vector<16x64xf32>, vector<16x64xf32> -> vector<16x256xf32>
    %c0_31 = arith.constant 0 : index
    %c0_32 = arith.constant 0 : index
    %c0_33 = arith.constant 0 : index
    %63 = vector.load %arg9[%c0_31, %c0_32, %c0_33] : memref<1x16x256xf32, #tpu.memory_space<vmem>>, vector<1x16x256xf32>
    %64 = vector.shape_cast %63 : vector<1x16x256xf32> to vector<16x256xf32>
    %65 = vector.shape_cast %62 : vector<16x256xf32> to vector<1x16x256xf32>
    tpu.vector_store %arg9[%c0_31, %c0_32, %c0_33], %65 {strides = array<i32>} : memref<1x16x256xf32, #tpu.memory_space<vmem>>, vector<1x16x256xf32>,
    return
  }
  func.func @transform_0(%arg0: i32) -> (i32, i32, i32) {
    %c0_i32 = arith.constant 0 : i32
    %c0_i32_0 = arith.constant 0 : i32
    %c0_i32_1 = arith.constant 0 : i32
    return %arg0, %c0_i32, %c0_i32_0 : i32, i32, i32
  }
  func.func @transform_1(%arg0: i32) -> (i32, i32, i32) {
    %c0_i32 = arith.constant 0 : i32
    %c0_i32_0 = arith.constant 0 : i32
    %c0_i32_1 = arith.constant 0 : i32
    return %arg0, %c0_i32, %c0_i32_0 : i32, i32, i32
  }
  func.func @transform_2(%arg0: i32) -> (i32, i32, i32) {
    %c0_i32 = arith.constant 0 : i32
    %c0_i32_0 = arith.constant 0 : i32
    %c0_i32_1 = arith.constant 0 : i32
    return %arg0, %c0_i32, %c0_i32_0 : i32, i32, i32
  }
  func.func @transform_3(%arg0: i32) -> (i32, i32, i32) {
    %c0_i32 = arith.constant 0 : i32
    %c0_i32_0 = arith.constant 0 : i32
    %c0_i32_1 = arith.constant 0 : i32
    return %arg0, %c0_i32, %c0_i32_0 : i32, i32, i32
  }
  func.func @transform_4(%arg0: i32) -> (i32, i32) {
    %c0_i32 = arith.constant 0 : i32
    %c0_i32_0 = arith.constant 0 : i32
    %c0_i32_1 = arith.constant 0 : i32
    return %c0_i32, %c0_i32_0 : i32, i32
  }
  func.func @transform_5(%arg0: i32) -> (i32, i32) {
    %c0_i32 = arith.constant 0 : i32
    %c0_i32_0 = arith.constant 0 : i32
    %c0_i32_1 = arith.constant 0 : i32
    return %c0_i32, %c0_i32_0 : i32, i32
  }
  func.func @transform_6(%arg0: i32) -> (i32, i32) {
    %c0_i32 = arith.constant 0 : i32
    %c0_i32_0 = arith.constant 0 : i32
    %c0_i32_1 = arith.constant 0 : i32
    return %c0_i32, %c0_i32_0 : i32, i32
  }
  func.func @transform_7(%arg0: i32) -> i32 {
    %c0_i32 = arith.constant 0 : i32
    %c0_i32_0 = arith.constant 0 : i32
    return %c0_i32 : i32
  }
  func.func @transform_8(%arg0: i32) -> (i32, i32, i32) {
    %c0_i32 = arith.constant 0 : i32
    %c0_i32_0 = arith.constant 0 : i32
    %c0_i32_1 = arith.constant 0 : i32
    return %arg0, %c0_i32, %c0_i32_0 : i32, i32, i32
  }
}

</mosaic_0001>

<bundles_post_ra>
// kernel: tpu_custom_call.1
= control target key start
LH: loop header
LB: loop body
LE: loop exit
PB: predicated region body
PF: predicated region fallthrough
CT: control target
= control target key end

     0   :  { %s1527_s0 = inlined_call_operand.vmem [shape: f32[2,16,64], index: 0, kind: input, shape index: {}]   ;;  %s1528_s1 = inlined_call_operand.vmem [shape: f32[2,12,64], index: 1, kind: input, shape index: {}]   ;;  %s1529_s2 = inlined_call_operand.vmem [shape: f32[2,16,1], index: 2, kind: input, shape index: {}]   ;;  %s1530_s3 = inlined_call_operand.vmem [shape: f32[2,1,12], index: 3, kind: input, shape index: {}]   ;;  %s1531_s4 = inlined_call_operand.vmem [shape: f32[1,64], index: 4, kind: input, shape index: {}]   ;;  %s1532_s5 = inlined_call_operand.vmem [shape: f32[1,64], index: 5, kind: input, shape index: {}]   ;;  %s1533_s6 = inlined_call_operand.vmem [shape: f32[1,64], index: 6, kind: input, shape index: {}]   ;;  %s1534_s7 = inlined_call_operand.<no memory space> [shape: f32[1], index: 7, kind: input, shape index: {}]   ;;  %s1535_s8 = inlined_call_operand.hbm [shape: f32[2,16,256], index: 8, kind: output, shape index: {}]  }
   0x1   :  { %13 = sst [smem:[#allocation2]] %s1534_s7 }
   0x2   :  { %14 = vsyncpa [#allocation4], 0 }
   0x3   :  { %16 = vsyncpa [#allocation4 + $0x1], 0  ;;  %s1344_s29 = smov 0   ;;  %s1346_s30 = smov 0  }
   0x4   :  { %s1348_s9 = smov 0   ;;  %s1350_s10 = smov 0  }
   0x5 LB: > { %s1365_s7 = sadd.s32 4294967295, %s1285_s10   ;;  %s1042_s11 = sadd.s32 4294967294, %s1285_s10   ;;  %s1285_s10 = sphi %s1350_s10, %s1543_s10   ;;  %s1281_s9 = sphi %s1348_s9, %s1542_s9   ;;  %s1277_s30 = sphi %s1346_s30, %s1541_s30   ;;  %s1273_s29 = sphi %s1344_s29, %s1540_s29  }
   0x6   : > { %s1369_s12 = sadd.s32 1, %s1285_s10   ;;  %s217_s13 = sadd.s32 1, %s1281_s9 }
   0x7   : > { %s214_s14 = ssub.s32 %s1285_s10, %s1369_s12  ;;  %p227_p0 = scmp.ne.s32.totalorder %s1281_s9, %s1277_s30 }
   0x8   : > { %p215_p1 = scmp.eq.s32.totalorder %s214_s14, 0  ;;  %p228_p2 = scmp.eq.s32.totalorder %s1365_s7, 1 }
   0x9   : > { %p233_p3 = scmp.ne.s32.totalorder %s1277_s30, %s1273_s29  ;;  %p234_p4 = scmp.eq.s32.totalorder %s1042_s11, 1 }
   0xa   : > { %s1380_s15 = scalar_select %p215_p1, %s1281_s9, %s217_s13  }
   0xb   : > { %p1382_p5 = por %p228_p2, %p227_p0  ;;  %p1386_p6 = por %p234_p4, %p233_p3 }
   0xc   : > { %p1045_p7 = scmp.ge.s32.totalorder %s1285_s10, 1  ;;  %p294_p8 = scmp.lt.s32.totalorder %s1285_s10, 3 }
   0xe   : > { %p295_p9 = pnand %p1045_p7, %p294_p8 }
   0xf   : > { %p341_p10 = scmp.lt.s32.totalorder (!%p295_p9), %s1365_s7, 1  ;;  %v1287_v0 = vmov (!%p295_p9), 0.0|0.0   ;;  %vm1288_vm0 = vmmov (!%p295_p9), 0   ;;  %v1289_v1 = vmov (!%p295_p9), 0.0   ;;  %vm386_vm1 = vcmask (!%p295_p9), 523264   ;;  %s369_s25 = sld [smem:[#allocation2]] (!%p295_p9) }
  0x10   : > { %298 = sbr.rel (%p295_p9) target bundleno = 1144 (0x478), region = 52  ;;  %1134 = vmatprep.subr.bf16.mxu0 (!%p295_p9), %v1287_v0  ;;  %1103 = vmatprep.mubr.msk.f32.mxu0 (!%p295_p9), %vm1288_vm0, %v1289_v1  ;;  %v1290_v2 = vmov (!%p295_p9), 0   ;;  %v1053_v3 = vld [vmem:[%s1533_s6] ss:$0 sm:$0xff] (!%p295_p9)  ;;  %vm1408_vm2 = vmpackc.low (!%p295_p9), %vm386_vm1, %vm386_vm1  ;;  %v553_v20 = vlaneseq (!%p295_p9)  ;;  %vm580_vm3 = vcmask (!%p295_p9), 97280   ;;  %vm664_vm4 = vcmask (!%p295_p9), 1043456  }
  0x11   : > { %1208 = vset.pattern.permute.xlu1 (!%p295_p9), %v1290_v2  ;;  %1207 = vset.pattern.permute.xlu0 (!%p295_p9), %v1290_v2  ;;  %v1054_v4 = vld [vmem:[%s1531_s4] ss:$0 sm:$0xff] (!%p295_p9)  ;;  %vm1291_vm5 = vmmov (!%p295_p9), 1   ;;  %vm1151_vm7 = vmpackc.low (!%p295_p9), %vm580_vm3, %vm580_vm3  ;;  %vm823_vm8 = vcmask (!%p295_p9), 130048   ;;  %s1079_s13 = sshll.u32 (!%p295_p9), %s1365_s7, 9  ;;  %s1293_s22 = smov (!%p295_p9), [#allocation3]  }
  0x12   : > { %v367_v17 = vld [vmem:[%s1532_s5] sm:$0x1] (!%p295_p9)  ;;  %v554_v22 = vshrl.u32 (!%p295_p9), %v553_v20, 7  ;;  %vm1145_vm6 = vmpackc.low (!%p295_p9), %vm664_vm4, %vm1291_vm5  ;;  %s1227_s23 = sshll.u32 (!%p295_p9), %s1293_s22, 4  ;;  %s1228_s23 = int_to_ptr.vmem [resolvable:$false] %s1227_s23 }
  0x14   : > { %v555_v24 = vsub.s32 (!%p295_p9), 0, %v554_v22 }
  0x15   : > { %v559_v35 = vstv (!%p295_p9), %s369_s25 }
  0x17   : > { %s1394_s18 = scalar_select %p341_p10, %s1365_s7, 1 }
  0x19   : > { %s1076_s19 = sshll.u32 %s1394_s18, 4  ;;  %s358_s24 = scalar_lea.vmem %s1530_s3, %s1394_s18 }
  0x1a   : > { %s350_s26 = scalar_lea.vmem %s1528_s1, %s1076_s19  ;;  %s345_s11 = scalar_lea.vmem %s1527_s0, %s1076_s19  ;;  %v365_v23 = vld [vmem:[%s358_s24] sm:$0x1] }
  0x1b   : > { %v361_v6 = vld [vmem:[%s350_s26] sm:$0xff]  ;;  %v362_v7 = vld [vmem:[%s350_s26 + $0x8] sm:$0xf]  ;;  %s355_s20 = scalar_lea.vmem %s1529_s2, %s1076_s19  ;;  %v570_v25 = vsub.f32 1.0, %v365_v23  ;;  %v566_v37 = vrot.slane %v365_v23, %v555_v24  ;;  %s1292_s18 = smov 64  }
  0x1c   : > { %v1415_v8 = vld [vmem:[%s345_s11] sm:$0xff]  ;;  %v1420_v9 = vpack.c.bf16 %v362_v7, %v361_v6  ;;  %v1422_v10 = vld [vmem:[%s345_s11 + $0x8] sm:$0xff]  ;;  %s338_s26 = sand.u32 1, %s1277_s30   ;;  %s1483_s19 = scalar_lea.hbm %s1535_s8, %s1079_s13 }
  0x1d   : > { %v376_v11 = vmul.f32 %v1053_v3, %v1415_v8  ;;  %v384_v12 = vmul.f32 %v1054_v4, %v1415_v8  ;;  %v364_v13 = vld [vmem:[%s355_s20 + $0x8] sm:$0xff]  ;;  %v385_v14 = vmul.f32 %v1054_v4, %v1422_v10  ;;  %v377_v18 = vmul.f32 %v1053_v3, %v1422_v10  ;;  %v363_v19 = vld [vmem:[%s355_s20] sm:$0xff]  ;;  %s1046_s27 = sshll.u32 %s338_s26, 5  ;;  %s1486_s21 = scalar_lea.sflag [#allocation4], %s338_s26 }
  0x1e   : > { %610 = vperm.xlu1 %1208, %v364_v13   ;;  %1137 = vmatpush3.bf16.xpose.msk.msra.mxu0 %vm1408_vm2, %v1420_v9  ;;  %v571_v33 = vmul.f32 -1e+30, %v570_v25  ;;  %v615_v48 = vsub.f32 1.0, %v363_v19  ;;  %v616_v49 = vsub.f32 1.0, %v364_v13  ;;  %s340_s28 = scalar_lea.vmem [#allocation3], %s1046_s27  ;;  %s1229_s24 = scalar_lea.vmem %s1228_s23, 1024 }
  0x1f   : > { %1140 = vmatprep.subr.msk.bf16.mxu1 %vm1408_vm2, %v1420_v9  ;;  %v387_v15 = vsel %vm386_vm1, %v384_v12, 0.0  ;;  %1110 = vmatprep.mubr.msk.f32.mxu1 %vm386_vm1, %v376_v11  ;;  %v390_v16 = vsel %vm386_vm1, %v385_v14, 0.0  ;;  %s947_s11 = sshll.u32 %s340_s28, 4  ;;  %s1478_s11 = int_to_ptr.vmem [resolvable:$true] %s947_s11 }
  0x20   : > { %1143 = vmatpush3.bf16.xpose.msk.msra.mxu1 %vm1408_vm2, %v1420_v9  ;;  %388 = vadd.xlane.f32.xlu0 %v387_v15  ;;  %v576_v40 = vrot.slane %v571_v33, %v555_v24  ;;  %v617_v50 = vmul.f32 -1e+30, %v615_v48  ;;  %v618_v51 = vmul.f32 -1e+30, %v616_v49  ;;  %s1223_s7 = scalar_lea.vmem %s1478_s11, 512  ;;  %p1230_p0 = scmp.lt.s32.totalorder %s1478_s11, %s1228_s23 }
  0x21   : > { %1146 = vmatprep.subr.msk.bf16.mxu0 %vm1145_vm6, %v1420_v9  ;;  %p1224_p11 = scmp.ne.s32.totalorder %s1478_s11, %s1223_s7  ;;  %p1231_p1 = scmp.lt.s32.totalorder %s1229_s24, %s1223_s7 }
  0x23   : > { %p1225_p12 = pnand %p1224_p11, %p1382_p5  ;;  %p1232_p2 = por %p1231_p1, %p1230_p0 }
  0x24   : > { %391 = vadd.xlane.f32.xlu0 %v390_v16 }
  0x25   : > { %1104 = vmatmul.mubr.msk.f32.vlgmr.msra.gmra.mrb[0].mxu0 %vm386_vm1, %v367_v17  ;;  %p1226_p13 = pneg %p1225_p12 }
  0x26   : > { %1149 = vmatpush3.bf16.msk.msra.mxu0 %vm1145_vm6, %v1420_v9 }
  0x27   : > { %1111 = vmatmul.mubr.msk.f32.vlgmr.msra.gmra.mrb[0].mxu1 %vm386_vm1, %v377_v18  ;;  %p1233_p3 = pnand %p1232_p2, %p1226_p13 }
  0x3a   : > { %605 = vperm.xlu0 %1207, %v363_v19  }
  0x9d   : > { %v611_v52 = vpop.permute.xlu1 %610 }
  0xad   : > { %v389_v21 = vpop.xlane.xlu0 %388 }
  0xb1   : > { %v392_v26 = vpop.xlane.xlu0 %391 }
  0xb9   : > { %v606_v58 = vpop.permute.xlu0 %605 }
  0xf8   : > { %v468_v27 = vpop.f32.mrb[0].mxu0 }
  0xf9   : > { %v556_v28 = vrot.slane %v468_v27, %v555_v24  ;;  %v1105_v29 = vpop.f32.mrb[1].mxu0 }
  0xfa   : > { %v1112_v30 = vpop.f32.mrb[0].mxu1 }
  0xfb   : > { %v550_v31 = vadd.f32 %v1112_v30, %v392_v26  ;;  %v544_v32 = vpop.f32.mrb[1].mxu1 }
  0xfc   : > { %v545_v34 = vadd.f32 %v544_v32, %v389_v21 }
  0xfd   : > { %v558_v36 = vadd.f32 %v556_v28, %v550_v31 }
  0xfe   : > { %v557_v38 = vadd.f32 %v556_v28, %v545_v34  ;;  %v1156_v28 = vpack.c.bf16 %v1422_v10, %v1415_v8 }
  0xff   : > { %v561_v39 = vadd.f32 %v559_v35, %v558_v36 }
 0x100   : > { %v560_v41 = vadd.f32 %v559_v35, %v557_v38  ;;  %1157 = vmatprep.subr.bf16.mxu0 %v1156_v28 }
 0x101   : > { %v569_v42 = vmul.f32 %v566_v37, %v561_v39  ;;  %v614_v62 = vmul.f32 %v611_v52, %v561_v39 }
 0x102   : > { %v568_v43 = vmul.f32 %v566_v37, %v560_v41  ;;  %v613_v61 = vmul.f32 %v606_v58, %v560_v41 }
 0x103   : > { %v579_v44 = vadd.f32 %v576_v40, %v569_v42 }
 0x104   : > { %v578_v46 = vadd.f32 %v576_v40, %v568_v43 }
 0x105   : > { %v584_v45 = vsel %vm580_vm3, %v579_v44, -inf }
 0x106   : > { %585 = vmax.xlane.f32.xlu1 %v584_v45  ;;  %v581_v47 = vsel %vm580_vm3, %v578_v46, -inf }
 0x10a   : > { %582 = vmax.xlane.f32.xlu1 %v581_v47 }
 0x11b   : > { %621 = vperm.xlu1 %1208, %v617_v50  }
 0x11f   : > { %626 = vperm.xlu1 %1208, %v618_v51  }
 0x193   : > { %v586_v53 = vpop.xlane.xlu1 %585 }
 0x194   : > { %v588_v54 = vsub.f32 %v579_v44, %v586_v53 }
 0x196   : > { %v591_v55 = vmul.f32 1.442695, %v588_v54 }
 0x197   : > { %v583_v56 = vpop.xlane.xlu1 %582 }
 0x198   : > { %1209 = vpow2.f32 %v591_v55  ;;  %v587_v57 = vsub.f32 %v578_v46, %v583_v56 }
 0x19a   : > { %v589_v59 = vmul.f32 1.442695, %v587_v57 }
 0x19b   : > { %v622_v60 = vpop.permute.xlu1 %621 }
 0x19c   : > { %1211 = vpow2.f32 %v589_v59  ;;  %v629_v63 = vadd.f32 %v622_v60, %v613_v61 }
 0x19e   : > { %v631_v3 = vsel %vm580_vm3, %v629_v63, -inf }
 0x19f   : > { %v627_v0 = vpop.permute.xlu1 %626 }
 0x1a0   : > { %v630_v1 = vadd.f32 %v627_v0, %v614_v62 }
 0x1a2   : > { %v1210_v2 = vpop.eup %1209  ;;  %v632_v4 = vsel %vm580_vm3, %v630_v1, -inf }
 0x1a3   : > { %v633_v5 = vmax.f32 %v631_v3, %v632_v4  ;;  %v596_v6 = vsel %vm580_vm3, %v1210_v2, 0.0 }
 0x1a4   : > { %597 = vadd.xlane.f32.xlu0 %v596_v6 }
 0x1a5   : > { %v634_v7 = vrot.slane %v633_v5, 4 }
 0x1a6   : > { %v1212_v11 = vpop.eup %1211 }
 0x1a7   : > { %v635_v12 = vmax.f32 %v633_v5, %v634_v7  ;;  %v593_v13 = vsel %vm580_vm3, %v1212_v11, 0.0 }
 0x1a8   : > { %594 = vadd.xlane.f32.xlu1 %v593_v13 }
 0x1a9   : > { %v636_v14 = vrot.slane %v635_v12, 2 }
 0x1ab   : > { %v637_v15 = vmax.f32 %v635_v12, %v636_v14 }
 0x1ad   : > { %v638_v16 = vrot.slane %v637_v15, 1 }
 0x1af   : > { %v639_v17 = vmax.f32 %v637_v15, %v638_v16 }
 0x1b1   : > { %v640_v18 = vsub.f32 %v629_v63, %v639_v17  ;;  %v641_v19 = vsub.f32 %v630_v1, %v639_v17 }
 0x1b3   : > { %v642_v20 = vmul.f32 1.442695, %v640_v18  ;;  %v644_v21 = vmul.f32 1.442695, %v641_v19 }
 0x1b5   : > { %1213 = vpow2.f32 %v642_v20 }
 0x1b6   : > { %1215 = vpow2.f32 %v644_v21 }
 0x1bf   : > { %v1214_v22 = vpop.eup %1213 }
 0x1c0   : > { %v1216_v23 = vpop.eup %1215  ;;  %v646_v24 = vsel %vm580_vm3, %v1214_v22, 0.0 }
 0x1c1   : > { %v647_v25 = vsel %vm580_vm3, %v1216_v23, 0.0 }
 0x1c2   : > { %v648_v26 = vadd.f32 %v647_v25, %v646_v24 }
 0x1c4   : > { %v649_v27 = vrot.slane %v648_v26, 4 }
 0x1c6   : > { %v650_v29 = vadd.f32 %v649_v27, %v648_v26 }
 0x1c8   : > { %v651_v30 = vrot.slane %v650_v29, 2 }
 0x1ca   : > { %v652_v31 = vadd.f32 %v651_v30, %v650_v29 }
 0x1cc   : > { %v653_v32 = vrot.slane %v652_v31, 1 }
 0x1ce   : > { %v654_v33 = vadd.f32 %v653_v32, %v652_v31 }
 0x1d0   : > { %1217 = vrcp.f32 %v654_v33 }
 0x1da   : > { %v1218_v34 = vpop.eup %1217 }
 0x1db   : > { %v656_v35 = vmul.f32 %v1218_v34, %v1214_v22  ;;  %v657_v36 = vmul.f32 %v1218_v34, %v1216_v23 }
 0x1dd   : > { %v1150_v9 = vpack.c.bf16 %v657_v36, %v656_v35 }
 0x1df   : > { %1152 = vmatprep.subr.msk.bf16.mxu1 %vm1151_vm7, %v1150_v9 }
 0x1e0   : > { %1155 = vmatpush3.bf16.xpose.msk.msra.mxu1 %vm1151_vm7, %v1150_v9 }
 0x231   : > { %v598_v37 = vpop.xlane.xlu0 %597 }
 0x232   : > { %1219 = vrcp.f32 %v598_v37 }
 0x235   : > { %v595_v38 = vpop.xlane.xlu1 %594 }
 0x236   : > { %1221 = vrcp.f32 %v595_v38 }
 0x23c   : > { %v1220_v39 = vpop.eup %1219 }
 0x23d   : > { %v602_v42 = vmul.f32 %v1220_v39, %v1210_v2 }
 0x240   : > { %v1222_v40 = vpop.eup %1221 }
 0x241   : > { %v600_v41 = vmul.f32 %v1222_v40, %v1212_v11 }
 0x243   : > { %1117 = vmatprep.mubr.msk.f32.mxu0 %vm580_vm3, %v600_v41  ;;  %1124 = vmatprep.mubr.msk.f32.mxu1 %vm580_vm3, %v600_v41 }
 0x244   : > { %1118 = vmatmul.mubr.msk.f32.vlgmr.msra.gmra.mrb[2].mxu0 %vm580_vm3, %v602_v42  ;;  %1125 = vmatmul.mubr.msk.f32.vlgmr.msra.gmra.mrb[2].mxu1 %vm580_vm3, %v602_v42 }
 0x245   : > { %1159 = vmatpush3.bf16.msra.mxu0 %v1156_v28 }
 0x317   : > { %v1119_v43 = vpop.f32.mrb[2].mxu0  ;;  %v1126_v44 = vpop.f32.mrb[2].mxu1 }
 0x318   : > { %v814_v45 = vpop.f32.mrb[3].mxu1  ;;  %913 = vrot.lane.b32.xlu0 %v1119_v43, %s1292_s18  ;;  %v733_v46 = vpop.f32.mrb[3].mxu0  ;;  %v906_v58 = vmul.f32 %v1119_v43, %v1422_v10 }
 0x319   : > { %1131 = vmatprep.mubr.msk.f32.mxu0 %vm823_vm8, %v814_v45  ;;  %911 = vrot.lane.b32.xlu1 %v733_v46, %s1292_s18  ;;  %v905_v55 = vmul.f32 %v733_v46, %v1415_v8 }
 0x31a   : > { %1132 = vmatmul.mubr.msk.f32.vlgmr.msra.gmra.mrb[4].mxu0 %vm823_vm8, %v1126_v44 }
 0x38a   : > { %v914_v47 = vpop.permute.xlu0 %913 }
 0x38b   : > { %v926_v48 = vsel %vm386_vm1, %v1422_v10, %v914_v47  ;;  %v912_v49 = vpop.permute.xlu1 %911 }
 0x38c   : > { %931 = vst [vmem:[%s340_s28 + $0x10] sm:$0xff] %v926_v48  ;;  %v925_v50 = vsel %vm386_vm1, %v1415_v8, %v912_v49 }
 0x38d   : > { %929 = vst [vmem:[%s340_s28] sm:$0xff] %v925_v50 }
 0x3ed   : > { %v1133_v51 = vpop.f32.mrb[4].mxu0 }
 0x3ee   : > { %v896_v52 = vpop.f32.mrb[5].mxu0  ;;  %v908_v54 = vmul.f32 %v1133_v51, %v1422_v10 }
 0x3ef   : > { %v907_v53 = vmul.f32 %v896_v52, %v1415_v8 }
 0x3f1   : > { %919 = vrot.lane.b32.xlu1 %v907_v53, %s1292_s18 }
 0x3f5   : > { %921 = vrot.lane.b32.xlu1 %v908_v54, %s1292_s18 }
 0x463   : > { %v920_v56 = vpop.permute.xlu1 %919 }
 0x464   : > { %v927_v57 = vsel %vm386_vm1, %v905_v55, %v920_v56 }
 0x465   : > { %930 = vst [vmem:[%s340_s28 + $0x8] sm:$0xff] %v927_v57 }
 0x467   : > { %v922_v59 = vpop.permute.xlu1 %921 }
 0x468   : > { %v928_v8 = vsel %vm386_vm1, %v906_v58, %v922_v59 }
 0x469   : > { %932 = vst [vmem:[%s340_s28 + $0x18] sm:$0xff] %v928_v8 }
 0x46a   : > { %1236 = shalt.err (!%p1233_p3)
}
 0x46b   : > { %s1237_s25 = scalar_lea.hbm %s1483_s19, 512  ;;  %s1241_s27 = scalar_lea.hbm %s1535_s8, 1024 }
 0x46c   : > { %p1238_p4 = scmp.ne.s32.totalorder %s1483_s19, %s1237_s25  ;;  %p1242_p9 = scmp.lt.u32.totalorder %s1483_s19, %s1535_s8 }
 0x46d   : > { %p1243_p10 = scmp.lt.u32.totalorder %s1241_s27, %s1237_s25  ;;  %p1245_p12 = scmp.lt.u32.totalorder %s1237_s25, %s1483_s19 }
 0x46e   : > { %p1239_p7 = pnand %p1238_p4, %p1382_p5 }
 0x46f   : > { %p1244_p11 = por %p1243_p10, %p1242_p9 }
 0x470   : > { %p1240_p8 = pneg %p1239_p7 }
 0x471   : > { %p1246_p13 = por %p1245_p12, %p1244_p11 }
 0x473   : > { %p1247_p0 = pnand %p1246_p13, %p1240_p8 }
 0x475   : > { %1250 = shalt.err (!%p1247_p0)
}
 0x476   : > { %s1294_s14 = smov 256   ;;  %s1295_s20 = smov 16  }
 0x477   : > { %1160 = dma.vmem_to_hbm [thread:$0]  (%p1382_p5), %s1478_s11, 512, %s1483_s19, %s1486_s21, %s1294_s14, %s1294_s14, %s1295_s20  }
 0x478 PF: > { %p1166_p1 = scmp.ge.s32.totalorder %s1285_s10, 2  ;;  %s962_s7 = sand.u32 1, %s1273_s29  }
 0x479   : > { %s963_s22 = scalar_lea.sflag [#allocation4], %s962_s7 }
 0x47a   : > { %p1163_p2 = pnand %p1166_p1, %p1386_p6 }
 0x47c   : > { %1268 = dma.done.wait (!%p1163_p2), %s963_s22, 512  }
 0x47d   : > { %1270 = vsyncadd (!%p1163_p2), %s963_s22, 4294966784  ;;  %p19_p3 = scmp.ge.s32.totalorder %s1369_s12, 4   ;;  %s1540_s29 = smov %s1277_s30 }
 0x47e   : > { %s1541_s30 = smov %s1281_s9  ;;  %s1542_s9 = smov %s1380_s15 }
 0x47f   : > { %s1543_s10 = smov %s1369_s12  ;;  %21 = sbr.rel (!%p19_p3) target bundleno = 5 (0x5), region = 96 }
 0x486   :  { %968 = vsyncpa [#allocation4], 1 }
 0x487   :  { %970 = vsyncpa [#allocation4 + $0x1], 1 }

</bundles_post_ra>
